<compile_context>
chip_gen: v5e
topology: v5e:2x2
jax: 0.10.0
libtpu: 0.0.40
codegen_flags: <defaults>
</compile_context>

<pallas_src>
import functools

import jax
import jax.numpy as jnp
from jax.experimental import pallas as pl
from jax.experimental.pallas import tpu as pltpu


def _pullup_kernel(x_ref, y_ref, e_ref, out_ref, *, alpha, acc_rows,
                   tile_rows, tiles_per_chunk, valid_rows):
    """Accumulate sum(bce(x, y) - alpha * e) for this chunk into out_ref.

    out_ref is an (acc_rows, C) f32 partial-sum block, resident in VMEM across
    the inner ("arbitrary") grid axis; the hot loop does only VPU adds.
    """
    i = pl.program_id(1)

    @pl.when(i == 0)
    def _():
        out_ref[...] = jnp.zeros_like(out_ref)

    x = x_ref[...].astype(jnp.float32)   # logits
    y = y_ref[...].astype(jnp.float32)   # labels
    e = e_ref[...].astype(jnp.float32)   # entropies

    # Numerically-stable BCE-with-logits (matches torch.nn.BCEWithLogitsLoss)
    # fused with the entropy term:
    #   contrib = [max(x,0) - x*y + log1p(exp(-|x|))] - alpha * e
    # TODO(synk): if the EUP slot ever saturates (bf16/fp8 on v7x), gate the
    # log1p(exp(-|x|)) term behind a |x| > ~7 threshold.
    contrib = (jnp.maximum(x, 0.0) - x * y + jnp.log1p(jnp.exp(-jnp.abs(x)))
               - jnp.float32(alpha) * e)

    t, c = contrib.shape
    if valid_rows % tile_rows != 0:
        # Ragged last tile: rows past the true row count may contain garbage
        # (no wrapper padding) -> select them to exactly zero contribution.
        tile_idx = pl.program_id(0) * tiles_per_chunk + i
        row_ids = tile_idx * tile_rows + jax.lax.broadcasted_iota(
            jnp.int32, (t, 1), 0)
        contrib = jnp.where(row_ids < valid_rows, contrib, 0.0)

    if t == acc_rows:
        partial = contrib
    else:
        # Sublane-axis split (acc_rows % 8 == 0) -> layout-trivial reshape;
        # summing the leading dim keeps acc_rows independent add chains.
        partial = jnp.sum(contrib.reshape(t // acc_rows, acc_rows, c), axis=0)
    out_ref[...] += partial


def _sublane_pack(dtype):
    # Sub-32-bit dtypes pack along sublanes: 8 rows (f32), 16 (bf16), 32 (i8).
    return max(8, 32 // jnp.dtype(dtype).itemsize)


def _pick_acc_rows(tile_rows, row_align):
    for a in (32, 16, 8):
        if a >= row_align and tile_rows % a == 0:
            return a
    return tile_rows  # tiny / odd tile: single chain, block == full dim


def pullup_loss(target_likelihoods, target_labels, target_entropies, alpha, *,
                target_block_bytes=None, num_chunks=None):
    """Scalar PULLUP loss for [rows, cols] inputs of any row count."""
    x, y, e = target_likelihoods, target_labels, target_entropies
    R, C = x.shape
    assert y.shape == (R, C) and e.shape == (R, C)
    n_elems = R * C

    # Lane-dense flatten: if C doesn't fill 128-lane vregs, contiguous-reshape
    # (free) to a k*128-wide layout so DMA and VPU lanes aren't wasted.
    if C % 128 != 0 and n_elems % 128 == 0:
        C = 128
        while n_elems % (2 * C) == 0 and C < 512:
            C *= 2
        R = n_elems // C
        x, y, e = (a.reshape(R, C) for a in (x, y, e))
    # TODO(synk): tile the lane (C) axis for very large C so blocks and the
    # accumulator also fit v7x's 64 MiB VMEM.

    dts = (x.dtype, y.dtype, e.dtype)
    row_align = max(_sublane_pack(d) for d in dts)
    max_item = max(jnp.dtype(d).itemsize for d in dts)
    sum_item = sum(jnp.dtype(d).itemsize for d in dts)

    # Generation-aware sizing (v7x: 64 MiB VMEM, 2 TensorCores per chip).
    try:
        vmem_cap = int(getattr(pltpu.get_tpu_info(), "vmem_capacity_bytes",
                               64 * 2**20))
    except Exception:
        vmem_cap = 64 * 2**20
    small_vmem = vmem_cap <= 64 * 2**20
    if target_block_bytes is None:
        target_block_bytes = (4 if small_vmem else 8) * 2**20
    if num_chunks is None:
        # 2-way row split only pays off on 2-TC chips; single-TC chips just
        # get a serial loop (and possible uneven tile counts) from it.
        num_chunks = 2 if small_vmem else 1

    # Row tile: largest aligned tile within the per-input block budget, capped
    # at R (rounded down) so no tile is mostly out of bounds.
    budget_rows = max(row_align,
                      (target_block_bytes // (C * max_item))
                      // row_align * row_align)
    if R >= row_align:
        tile_rows = min(budget_rows, (R // row_align) * row_align)
    else:
        tile_rows = R                       # tiny input: block == full dim

    total_tiles = pl.cdiv(R, tile_rows)
    chunks = max(1, min(num_chunks, total_tiles))
    while total_tiles % chunks:             # exact split: no wasted DMA tiles
        chunks -= 1
    tiles_per_chunk = total_tiles // chunks

    acc_rows = _pick_acc_rows(tile_rows, row_align)

    # Scoped VMEM: double-buffered inputs + f32 elementwise temporaries + the
    # resident output blocks + headroom.
    vmem_need = (2 * tile_rows * C * sum_item           # 3 inputs x 2 buffers
                 + 4 * tile_rows * C * 4                # f32 upcast/temporaries
                 + 2 * chunks * acc_rows * C * 4        # output blocks
                 + (2 << 20))
    vmem_limit = int(min(max(vmem_need, 32 << 20),
                         max(32 << 20, (vmem_cap * 3) // 4)))

    kernel = functools.partial(
        _pullup_kernel, alpha=float(alpha), acc_rows=acc_rows,
        tile_rows=tile_rows, tiles_per_chunk=tiles_per_chunk, valid_rows=R)
    in_map = lambda p, i: (p * tiles_per_chunk + i, 0)

    # TODO(synk): on v7x use pltpu.CORE_PARALLEL on axis 0 (or a core_map
    # tensorcore mesh) to guarantee the chunk split lands on both TensorCores.
    partials = pl.pallas_call(
        kernel,
        out_shape=jax.ShapeDtypeStruct((chunks, acc_rows, C), jnp.float32),
        grid_spec=pltpu.PrefetchScalarGridSpec(
            num_scalar_prefetch=0,
            grid=(chunks, tiles_per_chunk),
            in_specs=[
                pl.BlockSpec((tile_rows, C), in_map),
                pl.BlockSpec((tile_rows, C), in_map),
                pl.BlockSpec((tile_rows, C), in_map),
            ],
            out_specs=pl.BlockSpec((None, acc_rows, C),
                                   lambda p, i: (p, 0, 0)),
        ),
        compiler_params=pltpu.CompilerParams(
            dimension_semantics=("parallel", "arbitrary"),
            vmem_limit_bytes=vmem_limit),
    )(x, y, e)

    # Tiny final cross-lane reduce + single divide outside the hot loop.
    return jnp.sum(partials, dtype=jnp.float32) / jnp.float32(n_elems)


def _ref_loss(x, y, e, alpha):
    xf = x.astype(jnp.float32)
    yf = y.astype(jnp.float32)
    ef = e.astype(jnp.float32)
    bce = jnp.mean(jnp.maximum(xf, 0.0) - xf * yf
                   + jnp.log1p(jnp.exp(-jnp.abs(xf))))
    return bce - alpha * jnp.mean(ef)


if __name__ == "__main__":
    key = jax.random.PRNGKey(0)
    alpha = 0.5

    def make(k, r, c):
        k1, k2, k3 = jax.random.split(k, 3)
        xx = jax.random.normal(k1, (r, c), dtype=jnp.float32)
        yy = jax.random.bernoulli(k2, 0.5, (r, c)).astype(jnp.float32)
        ee = jax.random.uniform(k3, (r, c), dtype=jnp.float32)
        return xx, yy, ee

    ks = jax.random.split(key, 4)

    # Case 1: aligned single tile.
    x1, y1, e1 = make(ks[0], 16, 128)
    got = jax.block_until_ready(pullup_loss(x1, y1, e1, alpha))
    ref = _ref_loss(x1, y1, e1, alpha)
    assert jnp.allclose(got, ref, atol=1e-5, rtol=1e-5), (got, ref)

    # Case 2: ragged rows + forced multi-tile grid + 2-chunk parallel split
    # (exercises in-kernel tail masking with no wrapper-side padding).
    x2, y2, e2 = make(ks[1], 52, 128)
    got = jax.block_until_ready(
        pullup_loss(x2, y2, e2, alpha, target_block_bytes=8 * 1024,
                    num_chunks=2))
    ref = _ref_loss(x2, y2, e2, alpha)
    assert jnp.allclose(got, ref, atol=1e-5, rtol=1e-5), (got, ref)

    # Case 3: multi-chain (32-row) accumulator path + ragged tail in one tile.
    x3, y3, e3 = make(ks[2], 96, 128)
    got = jax.block_until_ready(
        pullup_loss(x3, y3, e3, alpha, target_block_bytes=32 * 1024,
                    num_chunks=1))
    ref = _ref_loss(x3, y3, e3, alpha)
    assert jnp.allclose(got, ref, atol=1e-5, rtol=1e-5), (got, ref)

    # Case 4: C < 128 -> lane-dense flatten in the wrapper.
    x4, y4, e4 = make(ks[3], 32, 64)
    got = jax.block_until_ready(pullup_loss(x4, y4, e4, alpha))
    ref = _ref_loss(x4, y4, e4, alpha)
    assert jnp.allclose(got, ref, atol=1e-5, rtol=1e-5), (got, ref)

    print("KERNEL_OK")
</pallas_src>

<mosaic_0001>
module attributes {stable_mosaic.version = 11 : i64} {
  func.func @_pullup_kernel(%arg0: i32, %arg1: i32, %arg2: memref<16x128xf32, #tpu.memory_space<vmem>>, %arg3: memref<16x128xf32, #tpu.memory_space<vmem>>, %arg4: memref<16x128xf32, #tpu.memory_space<vmem>>, %arg5: memref<1x16x128xf32, #tpu.memory_space<vmem>>) attributes {dimension_semantics = [#tpu.dimension_semantics<parallel>, #tpu.dimension_semantics<arbitrary>], iteration_bounds = array<i64: 1, 1>, scalar_prefetch = 0 : i64, scratch_operands = 0 : i64, tpu.core_type = #tpu.core_type<tc>, window_params = [{transform_indices = @transform_0, window_bounds = array<i64: 16, 128>}, {transform_indices = @transform_1, window_bounds = array<i64: 16, 128>}, {transform_indices = @transform_2, window_bounds = array<i64: 16, 128>}, {transform_indices = @transform_3, window_bounds = array<i64: 1, 16, 128>}]} {
    %c0_i32 = arith.constant 0 : i32
    %0 = arith.cmpi eq, %arg1, %c0_i32 : i32
    %1 = arith.extui %0 : i1 to i32
    %c0_i32_0 = arith.constant 0 : i32
    %2 = arith.cmpi ne, %1, %c0_i32_0 : i32
    scf.if %2 {
      %cst_14 = arith.constant 0.000000e+00 : f32
      %25 = vector.broadcast %cst_14 : f32 to vector<16x128xf32>
      %c0_15 = arith.constant 0 : index
      %c0_16 = arith.constant 0 : index
      %c0_17 = arith.constant 0 : index
      %26 = vector.load %arg5[%c0_15, %c0_16, %c0_17] : memref<1x16x128xf32, #tpu.memory_space<vmem>>, vector<1x16x128xf32>
      %27 = vector.shape_cast %26 : vector<1x16x128xf32> to vector<16x128xf32>
      %28 = vector.shape_cast %25 : vector<16x128xf32> to vector<1x16x128xf32>
      tpu.vector_store %arg5[%c0_15, %c0_16, %c0_17], %28 {strides = array<i32>} : memref<1x16x128xf32, #tpu.memory_space<vmem>>, vector<1x16x128xf32>,
    } else {
    }
    %c0 = arith.constant 0 : index
    %c0_1 = arith.constant 0 : index
    %3 = vector.load %arg2[%c0, %c0_1] : memref<16x128xf32, #tpu.memory_space<vmem>>, vector<16x128xf32>
    %c0_2 = arith.constant 0 : index
    %c0_3 = arith.constant 0 : index
    %4 = vector.load %arg3[%c0_2, %c0_3] : memref<16x128xf32, #tpu.memory_space<vmem>>, vector<16x128xf32>
    %c0_4 = arith.constant 0 : index
    %c0_5 = arith.constant 0 : index
    %5 = vector.load %arg4[%c0_4, %c0_5] : memref<16x128xf32, #tpu.memory_space<vmem>>, vector<16x128xf32>
    %cst = arith.constant 0.000000e+00 : f32
    %6 = vector.broadcast %cst : f32 to vector<16x128xf32>
    %7 = arith.maximumf %3, %6 : vector<16x128xf32>
    %8 = arith.mulf %3, %4 : vector<16x128xf32>
    %9 = arith.subf %7, %8 : vector<16x128xf32>
    %10 = math.absf %3 : vector<16x128xf32>
    %cst_6 = arith.constant 0.000000e+00 : f32
    %11 = vector.broadcast %cst_6 : f32 to vector<16x128xf32>
    %12 = arith.subf %11, %10 : vector<16x128xf32>
    %13 = math.exp %12 : vector<16x128xf32>
    %14 = math.log1p %13 : vector<16x128xf32>
    %15 = arith.addf %9, %14 : vector<16x128xf32>
    %cst_7 = arith.constant 5.000000e-01 : f32
    %16 = vector.broadcast %cst_7 : f32 to vector<16x128xf32>
    %17 = arith.mulf %16, %5 : vector<16x128xf32>
    %18 = arith.subf %15, %17 : vector<16x128xf32>
    %c0_8 = arith.constant 0 : index
    %c0_9 = arith.constant 0 : index
    %c0_10 = arith.constant 0 : index
    %19 = vector.load %arg5[%c0_8, %c0_9, %c0_10] : memref<1x16x128xf32, #tpu.memory_space<vmem>>, vector<1x16x128xf32>
    %20 = vector.shape_cast %19 : vector<1x16x128xf32> to vector<16x128xf32>
    %21 = arith.addf %20, %18 : vector<16x128xf32>
    %c0_11 = arith.constant 0 : index
    %c0_12 = arith.constant 0 : index
    %c0_13 = arith.constant 0 : index
    %22 = vector.load %arg5[%c0_11, %c0_12, %c0_13] : memref<1x16x128xf32, #tpu.memory_space<vmem>>, vector<1x16x128xf32>
    %23 = vector.shape_cast %22 : vector<1x16x128xf32> to vector<16x128xf32>
    %24 = vector.shape_cast %21 : vector<16x128xf32> to vector<1x16x128xf32>
    tpu.vector_store %arg5[%c0_11, %c0_12, %c0_13], %24 {strides = array<i32>} : memref<1x16x128xf32, #tpu.memory_space<vmem>>, vector<1x16x128xf32>,
    return
  }
  func.func @transform_0(%arg0: i32, %arg1: i32) -> (i32, i32) {
    %c1_i32 = arith.constant 1 : i32
    %0 = arith.muli %arg0, %c1_i32 : i32
    %1 = arith.addi %0, %arg1 : i32
    %c0_i32 = arith.constant 0 : i32
    %c0_i32_0 = arith.constant 0 : i32
    return %1, %c0_i32 : i32, i32
  }
  func.func @transform_1(%arg0: i32, %arg1: i32) -> (i32, i32) {
    %c1_i32 = arith.constant 1 : i32
    %0 = arith.muli %arg0, %c1_i32 : i32
    %1 = arith.addi %0, %arg1 : i32
    %c0_i32 = arith.constant 0 : i32
    %c0_i32_0 = arith.constant 0 : i32
    return %1, %c0_i32 : i32, i32
  }
  func.func @transform_2(%arg0: i32, %arg1: i32) -> (i32, i32) {
    %c1_i32 = arith.constant 1 : i32
    %0 = arith.muli %arg0, %c1_i32 : i32
    %1 = arith.addi %0, %arg1 : i32
    %c0_i32 = arith.constant 0 : i32
    %c0_i32_0 = arith.constant 0 : i32
    return %1, %c0_i32 : i32, i32
  }
  func.func @transform_3(%arg0: i32, %arg1: i32) -> (i32, i32, i32) {
    %c0_i32 = arith.constant 0 : i32
    %c0_i32_0 = arith.constant 0 : i32
    %c0_i32_1 = arith.constant 0 : i32
    return %arg0, %c0_i32, %c0_i32_0 : i32, i32, i32
  }
}

</mosaic_0001>

<bundles_post_ra>
// kernel: tpu_custom_call.1
= control target key start
LH: loop header
LB: loop body
LE: loop exit
PB: predicated region body
PF: predicated region fallthrough
CT: control target
= control target key end

     0   :  { %8 = vsyncpa [#allocation3], 0  ;;  %s323_s0 = inlined_call_operand.hbm [shape: f32[16,128], index: 0, kind: input, shape index: {}]   ;;  %s324_s1 = inlined_call_operand.hbm [shape: f32[16,128], index: 1, kind: input, shape index: {}]   ;;  %s325_s2 = inlined_call_operand.hbm [shape: f32[16,128], index: 2, kind: input, shape index: {}]   ;;  %s326_s3 = inlined_call_operand.hbm [shape: f32[1,16,128], index: 3, kind: output, shape index: {}]  }
   0x1   :  { %9 = vsyncpa [#allocation6], 0 }
   0x2   :  { %10 = vsyncpa [#allocation4], 0  ;;  %s36_s14 = sshll.u32 %s324_s1, 4  ;;  %s273_s15 = smov [#allocation5]   ;;  %s37_s14 = int_to_ptr.hbm [resolvable:$true] %s36_s14 }
   0x3   :  { %s38_s16 = sshll.u32 %s273_s15, 4  ;;  %s19_s19 = sshll.u32 %s323_s0, 4  ;;  %s39_s16 = int_to_ptr.vmem [resolvable:$true] %s38_s16  ;;  %s20_s19 = int_to_ptr.hbm [resolvable:$true] %s19_s19 }
   0x4   :  { %s274_s20 = smov 128   ;;  %s275_s21 = smov 8  }
   0x5   :  { %44 = dma.hbm_to_vmem [thread:$0]  %s37_s14, 256, %s39_s16, [#allocation6], %s274_s20, %s274_s20, %s275_s21  }
   0x6   :  { %s276_s22 = smov [#allocation2]   ;;  %s53_s1 = sshll.u32 %s325_s2, 4  ;;  %s54_s1 = int_to_ptr.hbm [resolvable:$true] %s53_s1 }
   0x7   :  { %s21_s23 = sshll.u32 %s276_s22, 4  ;;  %s277_s0 = smov [#allocation7]   ;;  %s22_s23 = int_to_ptr.vmem [resolvable:$true] %s21_s23 }
   0x8   :  { %27 = dma.hbm_to_vmem [thread:$0]  %s20_s19, 256, %s22_s23, [#allocation3], %s274_s20, %s274_s20, %s275_s21  }
   0x9   :  { %s55_s26 = sshll.u32 %s277_s0, 4  ;;  %s56_s26 = int_to_ptr.vmem [resolvable:$true] %s55_s26 }
   0xa   :  { %61 = dma.hbm_to_vmem [thread:$0]  %s54_s1, 256, %s56_s26, [#allocation6], %s274_s20, %s274_s20, %s275_s21  }
   0xb   :  { %267 = dma.done.wait [#allocation3], 256  }
   0xc   :  { %268 = vsyncadd [#allocation3], 4294967040 }
   0xd   :  { %269 = dma.done.wait [#allocation6], 512  }
   0xe   :  { %270 = vsyncadd [#allocation6], 4294966784  ;;  %v86_v0 = vld [vmem:[#allocation2] sm:$0xff]  ;;  %v87_v2 = vld [vmem:[#allocation2 + $0x8] sm:$0xff]  ;;  %s278_s2 = smov [#allocation8]   ;;  %s142_s30 = sshll.u32 %s326_s3, 4  ;;  %s143_s30 = int_to_ptr.hbm [resolvable:$true] %s142_s30 }
   0xf   :  { %v98_v1 = vand.u32 2147483647, %v86_v0  ;;  %v99_v3 = vand.u32 2147483647, %v87_v2  ;;  %v88_v12 = vld [vmem:[#allocation5] sm:$0xff]  ;;  %v89_v15 = vld [vmem:[#allocation5 + $0x8] sm:$0xff] }
  0x10   :  { %v92_v17 = vmax.f32 %v86_v0, 0.0  ;;  %v94_v18 = vmul.f32 %v88_v12, %v86_v0  ;;  %v93_v21 = vmax.f32 %v87_v2, 0.0  ;;  %v95_v22 = vmul.f32 %v89_v15, %v87_v2  ;;  %v90_v24 = vld [vmem:[#allocation7] sm:$0xff]  ;;  %v91_v28 = vld [vmem:[#allocation7 + $0x8] sm:$0xff]  ;;  %s140_s27 = sshll.u32 %s278_s2, 4  ;;  %s141_s27 = int_to_ptr.vmem [resolvable:$true] %s140_s27 }
  0x11   :  { %v100_v4 = vsub.f32 0.0, %v98_v1  ;;  %v101_v5 = vsub.f32 0.0, %v99_v3  ;;  %v126_v33 = vmul.f32 0.5, %v90_v24  ;;  %v127_v36 = vmul.f32 0.5, %v91_v28 }
  0x12   :  { %v96_v27 = vsub.f32 %v92_v17, %v94_v18  ;;  %v97_v32 = vsub.f32 %v93_v21, %v95_v22 }
  0x13   :  { %v102_v6 = vmul.f32 1.442695, %v100_v4  ;;  %v104_v7 = vmul.f32 1.442695, %v101_v5 }
  0x15   :  { %163 = vpow2.f32 %v102_v6 }
  0x16   :  { %165 = vpow2.f32 %v104_v7 }
  0x1b   :  { %v164_v8 = vpop.eup %163 }
  0x1c   :  { %v166_v9 = vpop.eup %165  ;;  %v106_v10 = vadd.f32 1.0, %v164_v8  ;;  %v109_v11 = vmul.f32 -0.5, %v164_v8  ;;  %v112_v19 = vand.u32 2147483647, %v164_v8 }
  0x1d   :  { %v115_v13 = vadd.f32 1.0, %v166_v9  ;;  %v118_v14 = vmul.f32 -0.5, %v166_v9  ;;  %v121_v23 = vand.u32 2147483647, %v166_v9 }
  0x1e   :  { %167 = vlog2.f32 %v106_v10  ;;  %v110_v16 = vadd.f32 1.0, %v109_v11  ;;  %vm113_vm0 = vcmp.lt.f32.partialorder %v112_v19, 0.0004427343 }
  0x1f   :  { %169 = vlog2.f32 %v115_v13  ;;  %v119_v20 = vadd.f32 1.0, %v118_v14  ;;  %vm122_vm1 = vcmp.lt.f32.partialorder %v121_v23, 0.0004427343 }
  0x20   :  { %v111_v25 = vmul.f32 %v164_v8, %v110_v16 }
  0x21   :  { %v120_v29 = vmul.f32 %v166_v9, %v119_v20 }
  0x24   :  { %v168_v26 = vpop.eup %167 }
  0x25   :  { %v170_v30 = vpop.eup %169  ;;  %v108_v31 = vmul.f32 0.6931472, %v168_v26 }
  0x26   :  { %v117_v34 = vmul.f32 0.6931472, %v170_v30 }
  0x27   :  { %v114_v35 = vsel %vm113_vm0, %v111_v25, %v108_v31 }
  0x28   :  { %v124_v37 = vadd.f32 %v114_v35, %v96_v27  ;;  %v123_v38 = vsel %vm122_vm1, %v120_v29, %v117_v34 }
  0x29   :  { %v125_v39 = vadd.f32 %v123_v38, %v97_v32 }
  0x2a   :  { %v128_v40 = vsub.f32 %v124_v37, %v126_v33 }
  0x2b   :  { %v129_v41 = vsub.f32 %v125_v39, %v127_v36 }
  0x2c   :  { %134 = vst [vmem:[#allocation8] sm:$0xff] %v128_v40 }
  0x2d   :  { %135 = vst [vmem:[#allocation8 + $0x8] sm:$0xff] %v129_v41 }
  0x2e   :  { %148 = dma.vmem_to_hbm [thread:$0]  %s141_s27, 256, %s143_s30, [#allocation4], %s274_s20, %s274_s20, %s275_s21  }
  0x2f   :  { %271 = dma.done.wait [#allocation4], 256  }
  0x30   :  { %272 = vsyncadd [#allocation4], 4294967040 }
  0x31   :  { %153 = vsyncpa [#allocation3], 1 }
  0x32   :  { %154 = vsyncpa [#allocation6], 1 }
  0x33   :  { %155 = vsyncpa [#allocation4], 1 }

</bundles_post_ra>
